<compile_context>
chip_gen: v6e
topology: v6e:2x2x1
jax: 0.10.0
libtpu: 0.0.40
codegen_flags: <defaults>
</compile_context>

<pallas_src>
import functools
import math

import jax
import jax.numpy as jnp
from jax import lax
from jax.experimental import pallas as pl
from jax.experimental.pallas import tpu as pltpu


def _cma_kernel(q_ref, k_ref, v_ref,
                wq_ref, wk_ref, wv_ref, wo_ref,
                in_b_ref, out_b_ref, gamma_ref, beta_ref,
                o_ref, acc_ref):
    """Grid = (batch_blocks, heads).  One step = one head of one batch block.
    The output projection is accumulated over the head axis into acc_ref; the
    residual + LayerNorm epilogue runs on the last head and does a single
    lane-dense store."""
    Bb, Lq, E = q_ref.shape
    _, Lk, _ = k_ref.shape
    rows_q = Bb * Lq
    h = pl.program_id(1)
    cdt = wq_ref.dtype                      # bf16 compute dtype for the MXU

    @pl.when(h == 0)
    def _():
        acc_ref[...] = jnp.zeros_like(acc_ref)

    # (rows, E) activation slabs in f32 (residual / LN path); bf16 only for dots.
    q_in = q_ref[...].reshape(rows_q, E)
    k_in = k_ref[...].reshape(Bb * Lk, E)
    v_in = v_ref[...].reshape(Bb * Lk, E)

    b3 = in_b_ref[...]                      # (1, 3, D) f32
    bq = b3[:, 0, :]
    bk = b3[:, 1, :]
    bv = b3[:, 2, :]

    # Per-head projections: x @ W_h.  The head slice of the weight is chosen by
    # the BlockSpec index_map (no in-kernel lane-offset slicing); the 1/sqrt(D)
    # attention scale is pre-folded into wq / bq in the wrapper.
    q_h = jnp.dot(q_in.astype(cdt), wq_ref[0],
                  preferred_element_type=jnp.float32) + bq        # (rows_q, D)
    k_h = jnp.dot(k_in.astype(cdt), wk_ref[0],
                  preferred_element_type=jnp.float32) + bk        # (rows_k, D)
    v_h = jnp.dot(v_in.astype(cdt), wv_ref[0],
                  preferred_element_type=jnp.float32) + bv        # (rows_k, D)

    D = q_h.shape[-1]
    qh3 = q_h.reshape(Bb, Lq, D)
    kh3 = k_h.reshape(Bb, Lk, D)
    vh3 = v_h.reshape(Bb, Lk, D)

    # Scaled dot-product attention for this head, batched over Bb.
    s = jnp.einsum("bqd,bkd->bqk", qh3.astype(cdt), kh3.astype(cdt),
                   preferred_element_type=jnp.float32)            # (Bb, Lq, Lk)
    m = jnp.max(s, axis=-1, keepdims=True)
    p = jnp.exp(s - m)                                            # unnormalized
    denom = jnp.sum(p, axis=-1, keepdims=True)

    # P@V on the unnormalized probabilities; normalize the small (Lq, D) context
    # with an EXACT reciprocal (approx recip broke validation tolerance).
    ctx = jnp.einsum("bqk,bkd->bqd", p.astype(cdt), vh3.astype(cdt),
                     preferred_element_type=jnp.float32)          # (Bb, Lq, D)
    ctx = ctx * pl.reciprocal(denom)

    # Accumulate this head's slice of the output projection.
    acc_ref[...] += jnp.dot(ctx.reshape(rows_q, D).astype(cdt), wo_ref[0],
                            preferred_element_type=jnp.float32)   # (rows_q, E)

    @pl.when(h == pl.num_programs(1) - 1)
    def _():
        # residual (dropout == identity in eval) + bias + LayerNorm, single store.
        y = q_in + acc_ref[...] + out_b_ref[...]
        s1 = jnp.sum(y, axis=-1, keepdims=True)
        s2 = jnp.sum(y * y, axis=-1, keepdims=True)
        mean = s1 * (1.0 / E)
        var = s2 * (1.0 / E) - mean * mean
        y = (y - mean) * lax.rsqrt(var + 1e-5)
        y = y * gamma_ref[...] + beta_ref[...]
        o_ref[...] = y.reshape(Bb, Lq, E).astype(o_ref.dtype)


def cross_modal_attention(query, key, value, params, *, num_heads,
                          batch_block=8, compute_dtype=jnp.bfloat16):
    B, Lq, E = query.shape
    _, Lk, _ = key.shape
    H = num_heads
    assert E % H == 0
    D = E // H
    scale = 1.0 / math.sqrt(D)

    in_w = params["in_proj_weight"]            # (3E, E), PyTorch layout
    in_b = params["in_proj_bias"]              # (3E,)

    # Wrapper-side weight prep (grid-invariant, done once):
    #  * transpose so the kernel does x @ W,
    #  * split output features into per-head (H, E, D)/(H, D, E) stacks,
    #  * fold the 1/sqrt(D) attention scale into Wq / bq,
    #  * cast matmul weights to bf16 for the MXU (f32 accumulation in-kernel).
    wq_h = (in_w[:E].T * scale).reshape(E, H, D).transpose(1, 0, 2).astype(compute_dtype)
    wk_h = in_w[E:2 * E].T.reshape(E, H, D).transpose(1, 0, 2).astype(compute_dtype)
    wv_h = in_w[2 * E:].T.reshape(E, H, D).transpose(1, 0, 2).astype(compute_dtype)
    wo_h = params["out_proj_weight"].T.reshape(H, D, E).astype(compute_dtype)
    in_b_h = jnp.stack([(in_b[:E] * scale).reshape(H, D),
                        in_b[E:2 * E].reshape(H, D),
                        in_b[2 * E:].reshape(H, D)], axis=1).astype(jnp.float32)  # (H, 3, D)
    out_b = params["out_proj_bias"].reshape(1, E).astype(jnp.float32)
    gamma = params["ln_weight"].reshape(1, E).astype(jnp.float32)
    beta = params["ln_bias"].reshape(1, E).astype(jnp.float32)

    # Batch blocking: keep >= 2 steps on the "parallel" batch axis (v7x has 2
    # TensorCores), and shrink the block until the per-step VMEM estimate fits.
    bb = max(1, min(batch_block, pl.cdiv(B, 2)))

    def vmem_est(bb_):
        act_io = 2 * 4 * bb_ * (2 * Lq + 2 * Lk) * E          # dbl-buffered q/k/v + out (f32)
        wts = 2 * 2 * (3 * E * D + D * E) + 4 * 3 * D          # dbl-buffered bf16 head weights
        scratch = 4 * bb_ * Lq * E                             # f32 accumulator
        tmp = 4 * bb_ * (3 * Lq * Lk + (Lq + 2 * Lk) * D)      # scores/p + per-head q/k/v
        return act_io + wts + scratch + tmp

    VMEM_BUDGET = 24 * 1024 * 1024
    while bb > 1 and vmem_est(bb) > VMEM_BUDGET:
        bb = (bb + 1) // 2

    # cdiv-based gridding: zero-pad the batch (padded rows are computed but
    # sliced off, so no in-kernel masking is needed).
    B_pad = pl.cdiv(B, bb) * bb
    if B_pad != B:
        pad = ((0, B_pad - B), (0, 0), (0, 0))
        query_p = jnp.pad(query, pad)
        key_p = jnp.pad(key, pad)
        value_p = jnp.pad(value, pad)
    else:
        query_p, key_p, value_p = query, key, value
    grid = (B_pad // bb, H)

    flops = (2 * B_pad * (Lq + 2 * Lk) * E * E      # q/k/v projections
             + 4 * B_pad * Lq * Lk * E              # QK^T + P@V (all heads)
             + 2 * B_pad * Lq * E * E)              # output projection
    bytes_accessed = (4 * B_pad * (2 * Lq + 2 * Lk) * E      # q/k/v in + out (f32)
                      + 2 * 4 * E * E + 4 * 6 * E)           # bf16 weights + f32 vectors
    cost = pl.CostEstimate(flops=flops,
                           transcendentals=B_pad * H * Lq * Lk,
                           bytes_accessed=bytes_accessed)

    out = pl.pallas_call(
        _cma_kernel,
        out_shape=jax.ShapeDtypeStruct((B_pad, Lq, E), query.dtype),
        grid_spec=pltpu.PrefetchScalarGridSpec(
            num_scalar_prefetch=0,
            grid=grid,
            in_specs=[
                pl.BlockSpec((bb, Lq, E), lambda b, h: (b, 0, 0)),   # query
                pl.BlockSpec((bb, Lk, E), lambda b, h: (b, 0, 0)),   # key
                pl.BlockSpec((bb, Lk, E), lambda b, h: (b, 0, 0)),   # value
                pl.BlockSpec((1, E, D), lambda b, h: (h, 0, 0)),     # Wq^T * scale, head h
                pl.BlockSpec((1, E, D), lambda b, h: (h, 0, 0)),     # Wk^T, head h
                pl.BlockSpec((1, E, D), lambda b, h: (h, 0, 0)),     # Wv^T, head h
                pl.BlockSpec((1, D, E), lambda b, h: (h, 0, 0)),     # Wo^T rows, head h
                pl.BlockSpec((1, 3, D), lambda b, h: (h, 0, 0)),     # (bq*scale, bk, bv), head h
                pl.BlockSpec((1, E), lambda b, h: (0, 0)),           # out_proj bias
                pl.BlockSpec((1, E), lambda b, h: (0, 0)),           # ln gamma
                pl.BlockSpec((1, E), lambda b, h: (0, 0)),           # ln beta
            ],
            out_specs=pl.BlockSpec((bb, Lq, E), lambda b, h: (b, 0, 0)),
            scratch_shapes=[pltpu.VMEM((bb * Lq, E), jnp.float32)],
        ),
        compiler_params=pltpu.CompilerParams(
            dimension_semantics=("parallel", "arbitrary"),
            vmem_limit_bytes=64 * 1024 * 1024,
        ),
        cost_estimate=cost,
    )(query_p, key_p, value_p, wq_h, wk_h, wv_h, wo_h, in_b_h, out_b, gamma, beta)

    return out[:B] if B_pad != B else out


def _reference(query, key, value, params, *, num_heads):
    """Pure-JAX reference replicating nn.MultiheadAttention (eval) + LayerNorm."""
    B, Lq, E = query.shape
    H, D = num_heads, E // num_heads
    in_w, in_b = params["in_proj_weight"], params["in_proj_bias"]
    q = query @ in_w[:E].T + in_b[:E]
    k = key @ in_w[E:2 * E].T + in_b[E:2 * E]
    v = value @ in_w[2 * E:].T + in_b[2 * E:]
    q = q.reshape(B, Lq, H, D).transpose(0, 2, 1, 3)
    k = k.reshape(B, -1, H, D).transpose(0, 2, 1, 3)
    v = v.reshape(B, -1, H, D).transpose(0, 2, 1, 3)
    s = jnp.einsum("bhqd,bhkd->bhqk", q, k) / math.sqrt(D)
    p = jax.nn.softmax(s, axis=-1)
    ctx = jnp.einsum("bhqk,bhkd->bhqd", p, v).transpose(0, 2, 1, 3).reshape(B, Lq, E)
    attn = ctx @ params["out_proj_weight"].T + params["out_proj_bias"]
    y = query + attn
    mean = y.mean(-1, keepdims=True)
    var = ((y - mean) ** 2).mean(-1, keepdims=True)
    return (y - mean) / jnp.sqrt(var + 1e-5) * params["ln_weight"] + params["ln_bias"]


if __name__ == "__main__":
    B, Lq, Lk, E, H = 2, 8, 8, 32, 4

    key0 = jax.random.PRNGKey(0)
    kq, kk, kv, kw1, kw2 = jax.random.split(key0, 5)

    query = jax.random.normal(kq, (B, Lq, E), jnp.float32)
    key_ = jax.random.normal(kk, (B, Lk, E), jnp.float32)
    value = jax.random.normal(kv, (B, Lk, E), jnp.float32)

    # deterministic synthetic parameters (shapes match nn.MultiheadAttention / LayerNorm)
    params = {
        "in_proj_weight": 0.05 * jax.random.normal(kw1, (3 * E, E), jnp.float32),
        "in_proj_bias": jnp.zeros((3 * E,), jnp.float32),
        "out_proj_weight": 0.05 * jax.random.normal(kw2, (E, E), jnp.float32),
        "out_proj_bias": jnp.zeros((E,), jnp.float32),
        "ln_weight": jnp.ones((E,), jnp.float32),
        "ln_bias": jnp.zeros((E,), jnp.float32),
    }

    out = cross_modal_attention(query, key_, value, params, num_heads=H)
    out = jax.block_until_ready(out)

    ref = _reference(query, key_, value, params, num_heads=H)
    assert out.shape == (B, Lq, E)
    # Tolerance reflects bf16 MXU inputs (f32 accumulation, f32 softmax/LayerNorm).
    assert jnp.allclose(out, ref, atol=2e-2, rtol=2e-2), "mismatch vs JAX reference"

    print("KERNEL_OK")
</pallas_src>

<mosaic_0001>
module attributes {stable_mosaic.version = 11 : i64} {
  func.func @_cma_kernel(%arg0: i32, %arg1: i32, %arg2: memref<1x8x32xf32, #tpu.memory_space<vmem>>, %arg3: memref<1x8x32xf32, #tpu.memory_space<vmem>>, %arg4: memref<1x8x32xf32, #tpu.memory_space<vmem>>, %arg5: memref<1x32x8xbf16, #tpu.memory_space<vmem>>, %arg6: memref<1x32x8xbf16, #tpu.memory_space<vmem>>, %arg7: memref<1x32x8xbf16, #tpu.memory_space<vmem>>, %arg8: memref<1x8x32xbf16, #tpu.memory_space<vmem>>, %arg9: memref<1x3x8xf32, #tpu.memory_space<vmem>>, %arg10: memref<1x32xf32, #tpu.memory_space<vmem>>, %arg11: memref<1x32xf32, #tpu.memory_space<vmem>>, %arg12: memref<1x32xf32, #tpu.memory_space<vmem>>, %arg13: memref<1x8x32xf32, #tpu.memory_space<vmem>>, %arg14: memref<8x32xf32, #tpu.memory_space<vmem>>) attributes {dimension_semantics = [#tpu.dimension_semantics<parallel>, #tpu.dimension_semantics<arbitrary>], iteration_bounds = array<i64: 2, 4>, scalar_prefetch = 0 : i64, scratch_operands = 1 : i64, tpu.core_type = #tpu.core_type<tc>, window_params = [{transform_indices = @transform_0, window_bounds = array<i64: 1, 8, 32>}, {transform_indices = @transform_1, window_bounds = array<i64: 1, 8, 32>}, {transform_indices = @transform_2, window_bounds = array<i64: 1, 8, 32>}, {transform_indices = @transform_3, window_bounds = array<i64: 1, 32, 8>}, {transform_indices = @transform_4, window_bounds = array<i64: 1, 32, 8>}, {transform_indices = @transform_5, window_bounds = array<i64: 1, 32, 8>}, {transform_indices = @transform_6, window_bounds = array<i64: 1, 8, 32>}, {transform_indices = @transform_7, window_bounds = array<i64: 1, 3, 8>}, {pipeline_mode = #tpu.pipeline_mode<synchronous>, transform_indices = @transform_8, window_bounds = array<i64: 1, 32>}, {pipeline_mode = #tpu.pipeline_mode<synchronous>, transform_indices = @transform_9, window_bounds = array<i64: 1, 32>}, {pipeline_mode = #tpu.pipeline_mode<synchronous>, transform_indices = @transform_10, window_bounds = array<i64: 1, 32>}, {transform_indices = @transform_11, window_bounds = array<i64: 1, 8, 32>}]} {
    %c0_i32 = arith.constant 0 : i32
    %0 = arith.cmpi eq, %arg1, %c0_i32 : i32
    %1 = arith.extui %0 : i1 to i32
    %c0_i32_0 = arith.constant 0 : i32
    %2 = arith.cmpi ne, %1, %c0_i32_0 : i32
    scf.if %2 {
      %cst_36 = arith.constant 0.000000e+00 : f32
      %64 = vector.broadcast %cst_36 : f32 to vector<8x32xf32>
      %c0_37 = arith.constant 0 : index
      %c0_38 = arith.constant 0 : index
      %65 = vector.load %arg14[%c0_37, %c0_38] : memref<8x32xf32, #tpu.memory_space<vmem>>, vector<8x32xf32>
      tpu.vector_store %arg14[%c0_37, %c0_38], %64 {strides = array<i32>} : memref<8x32xf32, #tpu.memory_space<vmem>>, vector<8x32xf32>,
    } else {
    }
    %c0 = arith.constant 0 : index
    %c0_1 = arith.constant 0 : index
    %c0_2 = arith.constant 0 : index
    %3 = vector.load %arg2[%c0, %c0_1, %c0_2] : memref<1x8x32xf32, #tpu.memory_space<vmem>>, vector<1x8x32xf32>
    %4 = vector.shape_cast %3 : vector<1x8x32xf32> to vector<8x32xf32>
    %c0_3 = arith.constant 0 : index
    %c0_4 = arith.constant 0 : index
    %c0_5 = arith.constant 0 : index
    %5 = vector.load %arg3[%c0_3, %c0_4, %c0_5] : memref<1x8x32xf32, #tpu.memory_space<vmem>>, vector<1x8x32xf32>
    %6 = vector.shape_cast %5 : vector<1x8x32xf32> to vector<8x32xf32>
    %c0_6 = arith.constant 0 : index
    %c0_7 = arith.constant 0 : index
    %c0_8 = arith.constant 0 : index
    %7 = vector.load %arg4[%c0_6, %c0_7, %c0_8] : memref<1x8x32xf32, #tpu.memory_space<vmem>>, vector<1x8x32xf32>
    %8 = vector.shape_cast %7 : vector<1x8x32xf32> to vector<8x32xf32>
    %c0_9 = arith.constant 0 : index
    %c0_10 = arith.constant 0 : index
    %c0_11 = arith.constant 0 : index
    %9 = vector.load %arg9[%c0_9, %c0_10, %c0_11] : memref<1x3x8xf32, #tpu.memory_space<vmem>>, vector<1x3x8xf32>
    %10 = vector.extract_strided_slice %9 {offsets = [0, 0, 0], sizes = [1, 1, 8], strides = [1, 1, 1]} : vector<1x3x8xf32> to vector<1x1x8xf32>
    %11 = vector.shape_cast %10 : vector<1x1x8xf32> to vector<1x8xf32>
    %12 = vector.extract_strided_slice %9 {offsets = [0, 1, 0], sizes = [1, 1, 8], strides = [1, 1, 1]} : vector<1x3x8xf32> to vector<1x1x8xf32>
    %13 = vector.shape_cast %12 : vector<1x1x8xf32> to vector<1x8xf32>
    %14 = vector.extract_strided_slice %9 {offsets = [0, 2, 0], sizes = [1, 1, 8], strides = [1, 1, 1]} : vector<1x3x8xf32> to vector<1x1x8xf32>
    %15 = vector.shape_cast %14 : vector<1x1x8xf32> to vector<1x8xf32>
    %16 = arith.truncf %4 : vector<8x32xf32> to vector<8x32xbf16>
    %c0_12 = arith.constant 0 : index
    %c0_13 = arith.constant 0 : index
    %c0_14 = arith.constant 0 : index
    %17 = vector.load %arg5[%c0_12, %c0_13, %c0_14] : memref<1x32x8xbf16, #tpu.memory_space<vmem>>, vector<1x32x8xbf16>
    %18 = vector.shape_cast %17 : vector<1x32x8xbf16> to vector<32x8xbf16>
    %cst = arith.constant dense<0.000000e+00> : vector<8x8xf32>
    %19 = tpu.matmul %16, %18, %cst {dimension_numbers = #tpu.dot_dimension_numbers<[1], [0], [0], [1], [0, 0, 1, 1], [], []>} : vector<8x32xbf16>, vector<32x8xbf16>, vector<8x8xf32> -> vector<8x8xf32>
    %20 = vector.broadcast %11 : vector<1x8xf32> to vector<8x8xf32>
    %21 = arith.addf %19, %20 : vector<8x8xf32>
    %22 = arith.truncf %6 : vector<8x32xf32> to vector<8x32xbf16>
    %c0_15 = arith.constant 0 : index
    %c0_16 = arith.constant 0 : index
    %c0_17 = arith.constant 0 : index
    %23 = vector.load %arg6[%c0_15, %c0_16, %c0_17] : memref<1x32x8xbf16, #tpu.memory_space<vmem>>, vector<1x32x8xbf16>
    %24 = vector.shape_cast %23 : vector<1x32x8xbf16> to vector<32x8xbf16>
    %cst_18 = arith.constant dense<0.000000e+00> : vector<8x8xf32>
    %25 = tpu.matmul %22, %24, %cst_18 {dimension_numbers = #tpu.dot_dimension_numbers<[1], [0], [0], [1], [0, 0, 1, 1], [], []>} : vector<8x32xbf16>, vector<32x8xbf16>, vector<8x8xf32> -> vector<8x8xf32>
    %26 = vector.broadcast %13 : vector<1x8xf32> to vector<8x8xf32>
    %27 = arith.addf %25, %26 : vector<8x8xf32>
    %28 = arith.truncf %8 : vector<8x32xf32> to vector<8x32xbf16>
    %c0_19 = arith.constant 0 : index
    %c0_20 = arith.constant 0 : index
    %c0_21 = arith.constant 0 : index
    %29 = vector.load %arg7[%c0_19, %c0_20, %c0_21] : memref<1x32x8xbf16, #tpu.memory_space<vmem>>, vector<1x32x8xbf16>
    %30 = vector.shape_cast %29 : vector<1x32x8xbf16> to vector<32x8xbf16>
    %cst_22 = arith.constant dense<0.000000e+00> : vector<8x8xf32>
    %31 = tpu.matmul %28, %30, %cst_22 {dimension_numbers = #tpu.dot_dimension_numbers<[1], [0], [0], [1], [0, 0, 1, 1], [], []>} : vector<8x32xbf16>, vector<32x8xbf16>, vector<8x8xf32> -> vector<8x8xf32>
    %32 = vector.broadcast %15 : vector<1x8xf32> to vector<8x8xf32>
    %33 = arith.addf %31, %32 : vector<8x8xf32>
    %34 = vector.shape_cast %21 : vector<8x8xf32> to vector<1x8x8xf32>
    %35 = vector.shape_cast %27 : vector<8x8xf32> to vector<1x8x8xf32>
    %36 = vector.shape_cast %33 : vector<8x8xf32> to vector<1x8x8xf32>
    %37 = arith.truncf %34 : vector<1x8x8xf32> to vector<1x8x8xbf16>
    %38 = arith.truncf %35 : vector<1x8x8xf32> to vector<1x8x8xbf16>
    "tpu.trace_start"() <{level = 10 : i32, message = "bqd,bkd->bqk"}> : () -> ()
    %cst_23 = arith.constant dense<0.000000e+00> : vector<1x8x8xf32>
    %39 = tpu.matmul %37, %38, %cst_23 {dimension_numbers = #tpu.dot_dimension_numbers<[2], [2], [1], [1], [0, 0, 0, 1, 1, 1], [0], [0]>} : vector<1x8x8xbf16>, vector<1x8x8xbf16>, vector<1x8x8xf32> -> vector<1x8x8xf32>
    "tpu.trace_stop"() : () -> ()
    %cst_24 = arith.constant dense<0xFF800000> : vector<1x8xf32>
    %40 = vector.multi_reduction <maximumf>, %39, %cst_24 [2] : vector<1x8x8xf32> to vector<1x8xf32>
    %41 = vector.shape_cast %40 : vector<1x8xf32> to vector<1x8x1xf32>
    %42 = vector.broadcast %41 : vector<1x8x1xf32> to vector<1x8x8xf32>
    %43 = arith.subf %39, %42 : vector<1x8x8xf32>
    %44 = math.exp %43 : vector<1x8x8xf32>
    %cst_25 = arith.constant dense<0.000000e+00> : vector<1x8xf32>
    %45 = vector.multi_reduction <add>, %44, %cst_25 [2] : vector<1x8x8xf32> to vector<1x8xf32>
    %46 = vector.shape_cast %45 : vector<1x8xf32> to vector<1x8x1xf32>
    %47 = arith.truncf %44 : vector<1x8x8xf32> to vector<1x8x8xbf16>
    %48 = arith.truncf %36 : vector<1x8x8xf32> to vector<1x8x8xbf16>
    "tpu.trace_start"() <{level = 10 : i32, message = "bqk,bkd->bqd"}> : () -> ()
    %cst_26 = arith.constant dense<0.000000e+00> : vector<1x8x8xf32>
    %49 = tpu.matmul %47, %48, %cst_26 {dimension_numbers = #tpu.dot_dimension_numbers<[2], [1], [1], [2], [0, 0, 0, 1, 1, 2], [0], [0]>} : vector<1x8x8xbf16>, vector<1x8x8xbf16>, vector<1x8x8xf32> -> vector<1x8x8xf32>
    "tpu.trace_stop"() : () -> ()
    %50 = tpu.reciprocal %46 : vector<1x8x1xf32> -> vector<1x8x1xf32>
    %51 = vector.broadcast %50 : vector<1x8x1xf32> to vector<1x8x8xf32>
    %52 = arith.mulf %49, %51 : vector<1x8x8xf32>
    %c0_27 = arith.constant 0 : index
    %c0_28 = arith.constant 0 : index
    %53 = vector.load %arg14[%c0_27, %c0_28] : memref<8x32xf32, #tpu.memory_space<vmem>>, vector<8x32xf32>
    %54 = vector.shape_cast %52 : vector<1x8x8xf32> to vector<8x8xf32>
    %55 = arith.truncf %54 : vector<8x8xf32> to vector<8x8xbf16>
    %c0_29 = arith.constant 0 : index
    %c0_30 = arith.constant 0 : index
    %c0_31 = arith.constant 0 : index
    %56 = vector.load %arg8[%c0_29, %c0_30, %c0_31] : memref<1x8x32xbf16, #tpu.memory_space<vmem>>, vector<1x8x32xbf16>
    %57 = vector.shape_cast %56 : vector<1x8x32xbf16> to vector<8x32xbf16>
    %cst_32 = arith.constant dense<0.000000e+00> : vector<8x32xf32>
    %58 = tpu.matmul %55, %57, %cst_32 {dimension_numbers = #tpu.dot_dimension_numbers<[1], [0], [0], [1], [0, 0, 1, 1], [], []>} : vector<8x8xbf16>, vector<8x32xbf16>, vector<8x32xf32> -> vector<8x32xf32>
    %59 = arith.addf %53, %58 : vector<8x32xf32>
    %c0_33 = arith.constant 0 : index
    %c0_34 = arith.constant 0 : index
    %60 = vector.load %arg14[%c0_33, %c0_34] : memref<8x32xf32, #tpu.memory_space<vmem>>, vector<8x32xf32>
    tpu.vector_store %arg14[%c0_33, %c0_34], %59 {strides = array<i32>} : memref<8x32xf32, #tpu.memory_space<vmem>>, vector<8x32xf32>,
    %c3_i32 = arith.constant 3 : i32
    %61 = arith.cmpi eq, %arg1, %c3_i32 : i32
    %62 = arith.extui %61 : i1 to i32
    %c0_i32_35 = arith.constant 0 : i32
    %63 = arith.cmpi ne, %62, %c0_i32_35 : i32
    scf.if %63 {
      %c0_36 = arith.constant 0 : index
      %c0_37 = arith.constant 0 : index
      %64 = vector.load %arg14[%c0_36, %c0_37] : memref<8x32xf32, #tpu.memory_space<vmem>>, vector<8x32xf32>
      %65 = arith.addf %4, %64 : vector<8x32xf32>
      %c0_38 = arith.constant 0 : index
      %c0_39 = arith.constant 0 : index
      %66 = vector.load %arg10[%c0_38, %c0_39] : memref<1x32xf32, #tpu.memory_space<vmem>>, vector<1x32xf32>
      %67 = vector.broadcast %66 : vector<1x32xf32> to vector<8x32xf32>
      %68 = arith.addf %65, %67 : vector<8x32xf32>
      %cst_40 = arith.constant dense<0.000000e+00> : vector<8xf32>
      %69 = vector.multi_reduction <add>, %68, %cst_40 [1] : vector<8x32xf32> to vector<8xf32>
      %70 = vector.shape_cast %69 : vector<8xf32> to vector<8x1xf32>
      %71 = arith.mulf %68, %68 : vector<8x32xf32>
      %cst_41 = arith.constant dense<0.000000e+00> : vector<8xf32>
      %72 = vector.multi_reduction <add>, %71, %cst_41 [1] : vector<8x32xf32> to vector<8xf32>
      %73 = vector.shape_cast %72 : vector<8xf32> to vector<8x1xf32>
      %cst_42 = arith.constant 3.125000e-02 : f32
      %74 = vector.broadcast %cst_42 : f32 to vector<8x1xf32>
      %75 = arith.mulf %70, %74 : vector<8x1xf32>
      %cst_43 = arith.constant 3.125000e-02 : f32
      %76 = vector.broadcast %cst_43 : f32 to vector<8x1xf32>
      %77 = arith.mulf %73, %76 : vector<8x1xf32>
      %78 = arith.mulf %75, %75 : vector<8x1xf32>
      %79 = arith.subf %77, %78 : vector<8x1xf32>
      %80 = vector.broadcast %75 : vector<8x1xf32> to vector<8x32xf32>
      %81 = arith.subf %68, %80 : vector<8x32xf32>
      %cst_44 = arith.constant 9.99999974E-6 : f32
      %82 = vector.broadcast %cst_44 : f32 to vector<8x1xf32>
      %83 = arith.addf %79, %82 : vector<8x1xf32>
      %84 = math.rsqrt %83 : vector<8x1xf32>
      %85 = vector.broadcast %84 : vector<8x1xf32> to vector<8x32xf32>
      %86 = arith.mulf %81, %85 : vector<8x32xf32>
      %c0_45 = arith.constant 0 : index
      %c0_46 = arith.constant 0 : index
      %87 = vector.load %arg11[%c0_45, %c0_46] : memref<1x32xf32, #tpu.memory_space<vmem>>, vector<1x32xf32>
      %88 = vector.broadcast %87 : vector<1x32xf32> to vector<8x32xf32>
      %89 = arith.mulf %86, %88 : vector<8x32xf32>
      %c0_47 = arith.constant 0 : index
      %c0_48 = arith.constant 0 : index
      %90 = vector.load %arg12[%c0_47, %c0_48] : memref<1x32xf32, #tpu.memory_space<vmem>>, vector<1x32xf32>
      %91 = vector.broadcast %90 : vector<1x32xf32> to vector<8x32xf32>
      %92 = arith.addf %89, %91 : vector<8x32xf32>
      %93 = vector.shape_cast %92 : vector<8x32xf32> to vector<1x8x32xf32>
      %c0_49 = arith.constant 0 : index
      %c0_50 = arith.constant 0 : index
      %c0_51 = arith.constant 0 : index
      %94 = vector.load %arg13[%c0_49, %c0_50, %c0_51] : memref<1x8x32xf32, #tpu.memory_space<vmem>>, vector<1x8x32xf32>
      tpu.vector_store %arg13[%c0_49, %c0_50, %c0_51], %93 {strides = array<i32>} : memref<1x8x32xf32, #tpu.memory_space<vmem>>, vector<1x8x32xf32>,
    } else {
    }
    return
  }
  func.func @transform_0(%arg0: i32, %arg1: i32) -> (i32, i32, i32) {
    %c0_i32 = arith.constant 0 : i32
    %c0_i32_0 = arith.constant 0 : i32
    %c0_i32_1 = arith.constant 0 : i32
    return %arg0, %c0_i32, %c0_i32_0 : i32, i32, i32
  }
  func.func @transform_1(%arg0: i32, %arg1: i32) -> (i32, i32, i32) {
    %c0_i32 = arith.constant 0 : i32
    %c0_i32_0 = arith.constant 0 : i32
    %c0_i32_1 = arith.constant 0 : i32
    return %arg0, %c0_i32, %c0_i32_0 : i32, i32, i32
  }
  func.func @transform_2(%arg0: i32, %arg1: i32) -> (i32, i32, i32) {
    %c0_i32 = arith.constant 0 : i32
    %c0_i32_0 = arith.constant 0 : i32
    %c0_i32_1 = arith.constant 0 : i32
    return %arg0, %c0_i32, %c0_i32_0 : i32, i32, i32
  }
  func.func @transform_3(%arg0: i32, %arg1: i32) -> (i32, i32, i32) {
    %c0_i32 = arith.constant 0 : i32
    %c0_i32_0 = arith.constant 0 : i32
    %c0_i32_1 = arith.constant 0 : i32
    return %arg1, %c0_i32, %c0_i32_0 : i32, i32, i32
  }
  func.func @transform_4(%arg0: i32, %arg1: i32) -> (i32, i32, i32) {
    %c0_i32 = arith.constant 0 : i32
    %c0_i32_0 = arith.constant 0 : i32
    %c0_i32_1 = arith.constant 0 : i32
    return %arg1, %c0_i32, %c0_i32_0 : i32, i32, i32
  }
  func.func @transform_5(%arg0: i32, %arg1: i32) -> (i32, i32, i32) {
    %c0_i32 = arith.constant 0 : i32
    %c0_i32_0 = arith.constant 0 : i32
    %c0_i32_1 = arith.constant 0 : i32
    return %arg1, %c0_i32, %c0_i32_0 : i32, i32, i32
  }
  func.func @transform_6(%arg0: i32, %arg1: i32) -> (i32, i32, i32) {
    %c0_i32 = arith.constant 0 : i32
    %c0_i32_0 = arith.constant 0 : i32
    %c0_i32_1 = arith.constant 0 : i32
    return %arg1, %c0_i32, %c0_i32_0 : i32, i32, i32
  }
  func.func @transform_7(%arg0: i32, %arg1: i32) -> (i32, i32, i32) {
    %c0_i32 = arith.constant 0 : i32
    %c0_i32_0 = arith.constant 0 : i32
    %c0_i32_1 = arith.constant 0 : i32
    return %arg1, %c0_i32, %c0_i32_0 : i32, i32, i32
  }
  func.func @transform_8(%arg0: i32, %arg1: i32) -> (i32, i32) {
    %c0_i32 = arith.constant 0 : i32
    %c0_i32_0 = arith.constant 0 : i32
    %c0_i32_1 = arith.constant 0 : i32
    return %c0_i32, %c0_i32_0 : i32, i32
  }
  func.func @transform_9(%arg0: i32, %arg1: i32) -> (i32, i32) {
    %c0_i32 = arith.constant 0 : i32
    %c0_i32_0 = arith.constant 0 : i32
    %c0_i32_1 = arith.constant 0 : i32
    return %c0_i32, %c0_i32_0 : i32, i32
  }
  func.func @transform_10(%arg0: i32, %arg1: i32) -> (i32, i32) {
    %c0_i32 = arith.constant 0 : i32
    %c0_i32_0 = arith.constant 0 : i32
    %c0_i32_1 = arith.constant 0 : i32
    return %c0_i32, %c0_i32_0 : i32, i32
  }
  func.func @transform_11(%arg0: i32, %arg1: i32) -> (i32, i32, i32) {
    %c0_i32 = arith.constant 0 : i32
    %c0_i32_0 = arith.constant 0 : i32
    %c0_i32_1 = arith.constant 0 : i32
    return %arg0, %c0_i32, %c0_i32_0 : i32, i32, i32
  }
}

</mosaic_0001>

<bundles_post_ra>
// kernel: tpu_custom_call.1
= control target key start
LH: loop header
LB: loop body
LE: loop exit
PB: predicated region body
PF: predicated region fallthrough
CT: control target
= control target key end

     0   :  { %s1655_s0 = inlined_call_operand.vmem [shape: f32[2,8,32], index: 0, kind: input, shape index: {}]   ;;  %s1656_s1 = inlined_call_operand.vmem [shape: f32[2,8,32], index: 1, kind: input, shape index: {}]   ;;  %s1657_s2 = inlined_call_operand.vmem [shape: f32[2,8,32], index: 2, kind: input, shape index: {}]   ;;  %s1658_s3 = inlined_call_operand.vmem [shape: bf16[4,32,8], index: 3, kind: input, shape index: {}]   ;;  %s1659_s4 = inlined_call_operand.vmem [shape: bf16[4,32,8], index: 4, kind: input, shape index: {}]   ;;  %s1660_s5 = inlined_call_operand.vmem [shape: bf16[4,32,8], index: 5, kind: input, shape index: {}]   ;;  %s1661_s6 = inlined_call_operand.vmem [shape: bf16[4,8,32], index: 6, kind: input, shape index: {}]   ;;  %s1662_s7 = inlined_call_operand.vmem [shape: f32[4,3,8], index: 7, kind: input, shape index: {}]   ;;  %s1663_s8 = inlined_call_operand.vmem [shape: f32[1,32], index: 8, kind: input, shape index: {}]   ;;  %s1664_s9 = inlined_call_operand.vmem [shape: f32[1,32], index: 9, kind: input, shape index: {}]   ;;  %s1665_s10 = inlined_call_operand.vmem [shape: f32[1,32], index: 10, kind: input, shape index: {}]   ;;  %s1666_s11 = inlined_call_operand.hbm [shape: f32[2,8,32], index: 11, kind: output, shape index: {}]  }
   0x1   :  { %1681 = sst [smem:[#allocation18_spill]] %s1656_s1 }
   0x2   :  { %1682 = sst [smem:[#allocation19_spill]] %s1666_s11 }
   0x3   :  { %16 = vsyncpa [#allocation4], 0 }
   0x4   :  { %18 = vsyncpa [#allocation4 + $0x1], 0  ;;  %s1442_s17 = smov 0   ;;  %s1444_s18 = smov 0  }
   0x5   :  { %s1446_s19 = smov 0   ;;  %s1448_s20 = smov 0  }
   0x6   :  { %s1450_s21 = smov 0   ;;  %s1452_s22 = smov 0  }
   0x7   :  { %s1454_s23 = smov 0   ;;  %s1456_s24 = smov 0  }
   0x8 LB: > { %1683 = sst [smem:[#allocation6_spill]] %s1348_s17  ;;  %s1100_s25 = sadd.s32 4294967295, %s1376_s24   ;;  %s1376_s24 = sphi %s1456_s24, %s24_s24   ;;  %s1372_s23 = sphi %s1454_s23, %s1714_s23   ;;  %s1368_s22 = sphi %s1452_s22, %s1713_s22   ;;  %s1364_s21 = sphi %s1450_s21, %s1712_s21   ;;  %s1360_s20 = sphi %s1448_s20, %s1711_s20   ;;  %s1356_s19 = sphi %s1446_s19, %s1710_s19   ;;  %s1352_s18 = sphi %s1444_s18, %s1709_s18   ;;  %s1348_s17 = sphi %s1442_s17, %s1708_s17  }
   0x9   : > { %1684 = sst [smem:[#allocation7_spill]] %s1352_s18  ;;  %s1101_s26 = sadd.s32 4294967294, %s1376_s24  }
   0xa   : > { %1685 = sst [smem:[#allocation8_spill]] %s1356_s19  ;;  %s33_s27 = sadd.s32 1, %s1368_s22 }
   0xb   : > { %1686 = sst [smem:[#allocation9_spill]] %s1364_s21  ;;  %p34_p0 = scmp.ge.s32.totalorder %s33_s27, 4 }
   0xc   : > { %1687 = sst [smem:[#allocation10_spill]] %s1368_s22  ;;  %s36_s28 = sadd.s32 1, %s1372_s23 }
   0xd   : > { %1688 = sst [smem:[#allocation11_spill]] %s1372_s23  ;;  %p324_p1 = scmp.ne.s32.totalorder %s1356_s19, %s1352_s18 }
   0xe   : > { %1689 = sst [smem:[#allocation12_spill]] %s1376_s24  ;;  %p325_p2 = scmp.eq.s32.totalorder %s1100_s25, 7 }
   0xf   : > { %s1716_s27 = smov (%p34_p0, %s33_s27), 0  ;;  %s1718_s28 = smov (!%p34_p0, %s36_s28), %s1372_s23 }
  0x10   : > { %1690 = sst [smem:[#allocation13_spill]] %s1716_s27  ;;  %p1491_p3 = por %p325_p2, %p324_p1 }
  0x11   : > { %p330_p4 = scmp.ne.s32.totalorder %s1352_s18, %s1348_s17  ;;  %p38_p5 = scmp.ge.s32.totalorder %s1718_s28, 2 }
  0x12   : > { %s1691_s29 = scalar_select %p1491_p3, 1, 0 }
  0x13   : > { %p331_p6 = scmp.eq.s32.totalorder %s1101_s26, 7  ;;  %p1104_p7 = scmp.ge.s32.totalorder %s1376_s24, 1 }
  0x14   : > { %1692 = sst [smem:[#allocation14_spill]] %s1691_s29  ;;  %p417_p8 = scmp.lt.s32.totalorder %s1376_s24, 9 }
  0x15   : > { %s1720_s28 = smov (%p38_p5, %s1718_s28), 0  ;;  %p1501_p9 = por %p331_p6, %p330_p4 }
  0x16   : > { %1693 = sst [smem:[#allocation15_spill]] %s1720_s28  ;;  %p418_p10 = pnand %p1104_p7, %p417_p8 }
  0x17   : > { %s1694_s30 = scalar_select %p1501_p9, 1, 0 }
  0x18   : > { %s311_s12 = ssub.s32 %s1372_s23, %s1720_s28  ;;  %s314_s13 = sadd.s32 1, %s1356_s19 }
  0x19   : > { %1695 = sst [smem:[#allocation16_spill]] %s1694_s30  ;;  %p312_p11 = scmp.eq.s32.totalorder %s311_s12, 0 }
  0x1a   : > { %421 = sbr.rel (%p418_p10) target bundleno = 1210 (0x4ba), region = 64  ;;  %s1671_s15 = sand.u32 (!%p418_p10), 1, %s1352_s18  }
  0x1b   : > { %s1509_s14 = scalar_select %p312_p11, %s1356_s19, %s314_s13  }
  0x1c   : > { %p487_p12 = scmp.lt.s32.totalorder (!%p418_p10), %s1364_s21, 1  ;;  %s1515_s16 = sshll.u32 (!%p418_p10), %s1671_s15, 3 }
  0x1d   : > { %1696 = sst [smem:[#allocation17_spill]] %s1509_s14  ;;  %p499_p13 = scmp.lt.s32.totalorder (!%p418_p10), %s1360_s20, 3 }
  0x1e   : > { %s1697_s1 = sld [smem:[#allocation18_spill]] (!%p418_p10)  ;;  %s486_s24 = scalar_lea.vmem (!%p418_p10), [#allocation3], %s1515_s16 }
  0x1f   : > { %s488_s25 = scalar_select %p487_p12, %s1364_s21, 1 }
  0x20   : > { %s500_s26 = scalar_select %p499_p13, %s1360_s20, 3 }
  0x21   : > { %s1520_s28 = sshll.u32 %s488_s25, 3  ;;  %p1117_p0 = scmp.ne.s32.totalorder %s1360_s20, 0 }
  0x22   : > { %s1138_s17 = sshll.u32 %s500_s26, 4  ;;  %s1115_s22 = sshll.u32 %s500_s26, 2 }
  0x23   : > { %s503_s25 = scalar_lea.vmem %s1658_s3, %s1138_s17  ;;  %s508_s12 = scalar_lea.vmem %s1659_s4, %s1138_s17 }
  0x24   : > { %s494_s14 = scalar_lea.vmem %s1697_s1, %s1520_s28  ;;  %s1543_s27 = scalar_lea.vmem %s1660_s5, %s1138_s17 }
  0x25   : > { %s1548_s19 = scalar_lea.vmem %s1661_s6, %s1115_s22  ;;  %s1553_s11 = scalar_lea.vmem %s1662_s7, %s1115_s22 }
  0x26   : > { %526 = sbr.rel (%p1117_p0) target bundleno = 45 (0x2d), region = 68 }
  0x2b   : > { %vm527_vm0 = vcmask 261120   ;;  %v1378_v0 = vmov 0.0  }
  0x2c   : > { %528 = vst.msk [vmem:[#allocation2] sm:$0xff] %vm527_vm0, %v1378_v0 }
  0x2d PF: > { %v1272_v1 = vld [vmem:[%s508_s12 + $0x8] sm:$0xff]   ;;  %v1379_v2 = vmov 0.0   ;;  %v1274_v4 = vld [vmem:[%s508_s12] sm:$0xff]   ;;  %vm1380_vm1 = vmmov 0   ;;  %s1698_s18 = scalar_lea.vmem %s1655_s0, %s1520_s28  ;;  %vm554_vm2 = vcmask 261120   ;;  %s1699_s30 = scalar_lea.vmem %s1657_s2, %s1520_s28  ;;  %v538_v14 = vlaneseq }
  0x2e   : > { %1164 = vmatprep.subr.bf16.mxu1 %v1379_v2  ;;  %1156 = vmatprep.subr.bf16.mxu0 %v1379_v2  ;;  %v1273_v3 = vld [vmem:[%s503_s25 + $0x8] sm:$0xff]   ;;  %v1275_v5 = vld [vmem:[%s503_s25] sm:$0xff]   ;;  %vm728_vm3 = vcmask 64512   ;;  %vm789_vm4 = vcmask 1043456   ;;  %p1130_p1 = scmp.ne.s32.totalorder %s1360_s20, 3 }
  0x2f   : > { %1165 = vmatpush3.bf16.msra.mxu1 %v1272_v1  ;;  %1168 = vmatprep.mubr.msk.bf16.mxu1 %vm1380_vm1, %v1379_v2  ;;  %v530_v6 = vld [vmem:[%s494_s14] sm:$0xff]  ;;  %v1276_v10 = vld [vmem:[%s1543_s27 + $0x8] sm:$0xff]   ;;  %v539_v15 = vshrl.u32 %v538_v14, 7 }
  0x30   : > { %1157 = vmatpush3.bf16.msra.mxu0 %v1273_v3  ;;  %1166 = vmatprep.subr.bf16.mxu1 %v1379_v2  ;;  %v1564_v7 = vld [vmem:[%s1698_s18] sm:$0xff]  ;;  %v598_v8 = vpack.c.bf16 %v530_v6, %v530_v6 }
  0x31   : > { %1158 = vmatprep.subr.bf16.mxu0 %v1379_v2  ;;  %1160 = vmatprep.mubr.msk.bf16.mxu0 %vm1380_vm1, %v1379_v2  ;;  %v533_v9 = vpack.c.bf16 %v1564_v7, %v1564_v7  ;;  %v1277_v11 = vld [vmem:[%s1543_s27] sm:$0xff]   ;;  %v605_v16 = vsub.s32 1, %v539_v15  ;;  %v540_v19 = vsub.s32 0, %v539_v15  ;;  %v669_v39 = vsub.s32 2, %v539_v15 }
  0x32   : > { %v531_v12 = vld [vmem:[%s1699_s30] sm:$0xff] }
  0x33   : > { %1167 = vmatpush3.bf16.msra.mxu1 %v1274_v4  ;;  %v662_v13 = vpack.c.bf16 %v531_v12, %v531_v12  ;;  %v532_v17 = vld [vmem:[%s1553_s11] sm:$0x7] }
  0x34   : > { %1159 = vmatpush3.bf16.msra.mxu0 %v1275_v5  ;;  %1180 = vmatprep.subr.bf16.mxu1 %v1379_v2  ;;  %v606_v18 = vrot.slane %v532_v17, %v605_v16  ;;  %v541_v22 = vrot.slane %v532_v17, %v540_v19  ;;  %v670_v41 = vrot.slane %v532_v17, %v669_v39  ;;  %v837_v54 = vld [vmem:[%s1548_s19] sm:$0xf] }
  0x35   : > { %1172 = vmatprep.subr.bf16.mxu0 %v1379_v2  ;;  %v842_v55 = vsel %vm789_vm4, %v837_v54, 0  ;;  %v835_v0 = vld [vmem:[#allocation2] sm:$0xff] }
  0x36   : > { %1169 = vmatmul.mubr.msk.bf16.vlgmr.msra.gmra.mxu1 %vm554_vm2, %v598_v8 }
  0x37   : > { %1161 = vmatmul.mubr.msk.bf16.vlgmr.msra.gmra.mxu0 %vm554_vm2, %v533_v9  ;;  %1182 = vmatprep.mubr.msk.bf16.mxu1 %vm1380_vm1, %v1379_v2 }
  0x38   : > { %1176 = vmatprep.mubr.msk.bf16.mxu0 %vm1380_vm1, %v1379_v2  ;;  %1173 = vmatpush3.bf16.msra.mxu0 %v1276_v10 }
  0x39   : > { %1174 = vmatprep.subr.bf16.mxu0 %v1379_v2 }
  0x3c   : > { %1175 = vmatpush3.bf16.msra.mxu0 %v1277_v11 }
  0x3d   : > { %1186 = vmatprep.subr.bf16.mxu0 %v1379_v2 }
  0x3f   : > { %1177 = vmatmul.mubr.msk.bf16.vlgmr.msra.gmra.mxu0 %vm554_vm2, %v662_v13 }
  0x40   : > { %1188 = vmatprep.mubr.msk.bf16.mxu0 %vm1380_vm1, %v1379_v2 }
  0xf6   : > { %v656_v20 = vpop.f32.mrf.mxu1 }
  0xf7   : > { %v657_v21 = vadd.f32 %v656_v20, %v606_v18  ;;  %v592_v23 = vpop.f32.mrf.mxu0 }
  0xf8   : > { %v1170_v24 = vpop.f32.mrf.mxu1  ;;  %v593_v29 = vadd.f32 %v592_v23, %v541_v22 }
  0xf9   : > { %v727_v25 = vpack.c.bf16 %v657_v21, %v657_v21  ;;  %v1162_v26 = vpop.f32.mrf.mxu0 }
  0xfa   : > { %v659_v27 = vpop.f32.mrf.mxu1  ;;  %v726_v33 = vpack.c.bf16 %v593_v29, %v593_v29 }
  0xfb   : > { %v733_v28 = vsel %vm728_vm3, %v727_v25, 0  ;;  %v595_v30 = vpop.f32.mrf.mxu0 }
  0xfc   : > { %v1171_v31 = vpop.f32.mrf.mxu1  ;;  %1181 = vmatpush3.bf16.xpose.msra.mxu1 %v733_v28 }
  0xfd   : > { %v1163_v32 = vpop.f32.mrf.mxu0  ;;  %1192 = vmatprep.subr.bf16.mxu1 %v1379_v2 }
  0xff   : > { %v720_v40 = vpop.f32.mrf.mxu0 }
 0x100   : > { %v721_v43 = vadd.f32 %v720_v40, %v670_v41 }
 0x101   : > { %v1178_v42 = vpop.f32.mrf.mxu0 }
 0x102   : > { %v785_v45 = vpack.c.bf16 %v721_v43, %v721_v43 }
 0x103   : > { %1183 = vmatmul.mubr.msk.bf16.vlgmr.msra.gmra.mxu1 %vm728_vm3, %v726_v33  ;;  %v723_v44 = vpop.f32.mrf.mxu0 }
 0x104   : > { %1194 = vmatprep.mubr.msk.bf16.mxu1 %vm1380_vm1, %v1379_v2  ;;  %v791_v47 = vsel %vm789_vm4, %v785_v45, 0  ;;  %1193 = vmatpush3.bf16.msra.mxu1 %v842_v55 }
 0x105   : > { %v1179_v46 = vpop.f32.mrf.mxu0  ;;  %1187 = vmatpush3.bf16.msra.mxu0 %v791_v47 }
 0x1c3   : > { %v769_v34 = vpop.f32.mrf.mxu1 }
 0x1c4   : > { %v775_v35 = vsel %vm728_vm3, %v769_v34, -inf }
 0x1c5   : > { %776 = vmax.xlane.f32.xlu0 %v775_v35  ;;  %v1184_v36 = vpop.f32.mrf.mxu1 }
 0x1c7   : > { %v772_v37 = vpop.f32.mrf.mxu1 }
 0x1c9   : > { %v1185_v38 = vpop.f32.mrf.mxu1 }
 0x24e   : > { %v777_v48 = vpop.xlane.xlu0 %776 }
 0x24f   : > { %v778_v49 = vsub.f32 %v769_v34, %v777_v48 }
 0x251   : > { %v779_v50 = vmul.f32 1.442695, %v778_v49 }
 0x253   : > { %1278 = vpow2.f32 %v779_v50 }
 0x260   : > { %v1279_v51 = vpop.eup %1278 }
 0x261   : > { %v781_v52 = vsel %vm728_vm3, %v1279_v51, 0.0  ;;  %v784_v53 = vpack.c.bf16 %v1279_v51, %v1279_v51 }
 0x262   : > { %782 = vadd.xlane.f32.xlu0 %v781_v52 }
 0x263   : > { %1189 = vmatmul.mubr.msk.bf16.vlgmr.msra.gmra.mxu0 %vm728_vm3, %v784_v53 }
 0x2eb   : > { %v783_v56 = vpop.xlane.xlu0 %782 }
 0x2ec   : > { %1280 = vrcp.f32 %v783_v56 }
 0x2f9   : > { %v1281_v57 = vpop.eup %1280 }
 0x323   : > { %v827_v58 = vpop.f32.mrf.mxu0 }
 0x324   : > { %v834_v59 = vmul.f32 %v1281_v57, %v827_v58 }
 0x325   : > { %v1190_v60 = vpop.f32.mrf.mxu0 }
 0x326   : > { %v836_v61 = vpack.c.bf16 %v834_v59, %v834_v59 }
 0x327   : > { %v830_v62 = vpop.f32.mrf.mxu0 }
 0x328   : > { %1195 = vmatmul.mubr.msk.bf16.vlgmr.msra.gmra.mxu1 %vm728_vm3, %v836_v61 }
 0x329   : > { %v1191_v63 = vpop.f32.mrf.mxu0 }
 0x3e8   : > { %v878_v1 = vpop.f32.mrf.mxu1 }
 0x3e9   : > { %v884_v2 = vadd.f32 %v878_v1, %v835_v0 }
 0x3ea   : > { %v1196_v3 = vpop.f32.mrf.mxu1  ;;  %889 = sbr.rel (%p1130_p1) target bundleno = 1185 (0x4a1), region = 72 }
 0x3eb   : > { %885 = vst.msk [vmem:[#allocation2] sm:$0xff] %vm554_vm2, %v884_v2 }
 0x3ec   : > { %v881_v4 = vpop.f32.mrf.mxu1 }
 0x3ee   : > { %v1197_v5 = vpop.f32.mrf.mxu1 }
 0x3ef   : > { %v1131_v8 = vld [vmem:[%s1663_s8] ss:$0 sm:$0xff] }
 0x3f0   : > { %v1133_v24 = vld [vmem:[%s1665_s10] ss:$0 sm:$0xff] }
 0x3f2   : > { %v890_v6 = vld [vmem:[#allocation2] sm:$0xff] }
 0x3f3   : > { %v891_v9 = vadd.f32 %v890_v6, %v1564_v7  ;;  %v1132_v7 = vld [vmem:[%s1664_s9] ss:$0 sm:$0xff] }
 0x3f5   : > { %v899_v10 = vadd.f32 %v1131_v8, %v891_v9 }
 0x3f7   : > { %v900_v11 = vsel %vm554_vm2, %v899_v10, 0.0  ;;  %v903_v12 = vmul.f32 %v899_v10, %v899_v10 }
 0x3f8   : > { %901 = vadd.xlane.f32.xlu0 %v900_v11 }
 0x3f9   : > { %v904_v13 = vsel %vm554_vm2, %v903_v12, 0.0 }
 0x3fc   : > { %905 = vadd.xlane.f32.xlu0 %v904_v13 }
 0x481   : > { %v902_v14 = vpop.xlane.xlu0 %901 }
 0x482   : > { %v907_v15 = vmul.f32 0.03125, %v902_v14 }
 0x484   : > { %v909_v17 = vmul.f32 %v907_v15, %v907_v15  ;;  %v911_v21 = vsub.f32 %v899_v10, %v907_v15 }
 0x485   : > { %v906_v16 = vpop.xlane.xlu0 %905 }
 0x486   : > { %v908_v18 = vmul.f32 0.03125, %v906_v16 }
 0x488   : > { %v910_v19 = vsub.f32 %v908_v18, %v909_v17 }
 0x48a   : > { %v912_v20 = vadd.f32 1e-05, %v910_v19 }
 0x48c   : > { %1282 = vrsqrt.f32 %v912_v20 }
 0x499   : > { %v1283_v22 = vpop.eup %1282 }
 0x49a   : > { %v914_v23 = vmul.f32 %v1283_v22, %v911_v21 }
 0x49c   : > { %v922_v25 = vmul.f32 %v1132_v7, %v914_v23 }
 0x49e   : > { %v930_v26 = vadd.f32 %v1133_v24, %v922_v25 }
 0x4a0   : > { %931 = vst.msk [vmem:[%s486_s24] sm:$0xff] %vm554_vm2, %v930_v26 }
 0x4a1 PF: > { %s1700_s12 = sld [smem:[#allocation9_spill]]  ;;  %s946_s17 = sshll.u32 %s486_s24, 4  ;;  %s947_s17 = int_to_ptr.vmem [resolvable:$true] %s946_s17 }
 0x4a2   : > { %s1701_s13 = sld [smem:[#allocation7_spill]]  ;;  %s1284_s29 = scalar_lea.vmem %s947_s17, 128 }
 0x4a3   : > { %s1703_s11 = sld [smem:[#allocation19_spill]]  ;;  %p1285_p2 = scmp.ne.s32.totalorder %s947_s17, %s1284_s29 }
 0x4a4   : > { %s1381_s30 = smov [#allocation3]  }
 0x4a5   : > { %p1286_p4 = pnand %p1285_p2, %p1491_p3  ;;  %s1288_s27 = sshll.u32 %s1381_s30, 4  ;;  %s1289_s27 = int_to_ptr.vmem [resolvable:$false] %s1288_s27 }
 0x4a6   : > { %s1290_s28 = scalar_lea.vmem %s1289_s27, 256  ;;  %p1291_p6 = scmp.lt.s32.totalorder %s947_s17, %s1289_s27 }
 0x4a7   : > { %s1135_s23 = sshll.u32 %s1700_s12, 7  ;;  %p1287_p5 = pneg %p1286_p4 }
 0x4a8   : > { %s1704_s18 = sand.u32 1, %s1701_s13   ;;  %p1292_p7 = scmp.lt.s32.totalorder %s1290_s28, %s1284_s29 }
 0x4a9   : > { %s944_s1 = scalar_lea.hbm %s1703_s11, %s1135_s23  ;;  %s933_s21 = scalar_lea.sflag [#allocation4], %s1704_s18 }
 0x4aa   : > { %p1293_p8 = por %p1292_p7, %p1291_p6 }
 0x4ac   : > { %p1294_p10 = pnand %p1293_p8, %p1287_p5 }
 0x4ae   : > { %1297 = shalt.err (!%p1294_p10)
}
 0x4af   : > { %s1298_s20 = scalar_lea.hbm %s944_s1, 128  ;;  %s1302_s14 = scalar_lea.hbm %s1703_s11, 256 }
 0x4b0   : > { %p1299_p11 = scmp.ne.s32.totalorder %s944_s1, %s1298_s20  ;;  %p1303_p0 = scmp.lt.s32.totalorder %s944_s1, %s1703_s11 }
 0x4b1   : > { %p1304_p1 = scmp.lt.s32.totalorder %s1302_s14, %s1298_s20 }
 0x4b2   : > { %p1300_p12 = pnand %p1299_p11, %p1491_p3 }
 0x4b3   : > { %p1305_p2 = por %p1304_p1, %p1303_p0 }
 0x4b4   : > { %p1301_p13 = pneg %p1300_p12 }
 0x4b6   : > { %p1306_p4 = pnand %p1305_p2, %p1301_p13 }
 0x4b8   : > { %1309 = shalt.err (!%p1306_p4)
}
 0x4b9   : > { %1198 = dma.vmem_to_hbm [thread:$0]  (%p1491_p3), %s947_s17, 128, %s944_s1, %s933_s21  }
 0x4ba PF: > { %s1705_s12 = sld [smem:[#allocation12_spill]] }
 0x4bb   : > { %s1706_s13 = sld [smem:[#allocation6_spill]] }
 0x4c0   : > { %p1204_p5 = scmp.ge.s32.totalorder %s1705_s12, 2 }
 0x4c1   : > { %s958_s19 = sand.u32 1, %s1706_s13  }
 0x4c2   : > { %p1201_p6 = pnand %p1204_p5, %p1501_p9  ;;  %s959_s15 = scalar_lea.sflag [#allocation4], %s958_s19 }
 0x4c4   : > { %p1202_p7 = pneg %p1201_p6 }
 0x4c6   : > { %1343 = dma.done.wait (%p1202_p7), %s959_s15, 128  }
 0x4c7   : > { %1345 = vsyncadd (%p1202_p7), %s959_s15, 4294967168  ;;  %s24_s24 = sadd.s32 1, %s1705_s12   ;;  %s1708_s17 = sld [smem:[#allocation7_spill]] }
 0x4c8   : > { %p21_p8 = scmp.ge.s32.totalorder %s24_s24, 10   ;;  %s1709_s18 = sld [smem:[#allocation8_spill]] }
 0x4c9   : > { %s1710_s19 = sld [smem:[#allocation17_spill]] }
 0x4ca   : > { %s1711_s20 = sld [smem:[#allocation10_spill]]  ;;  %23 = sbr.rel (!%p21_p8) target bundleno = 8 (0x8), region = 128 }
 0x4cb   : > { %s1712_s21 = sld [smem:[#allocation11_spill]] }
 0x4cc   : > { %s1713_s22 = sld [smem:[#allocation13_spill]] }
 0x4cd   : > { %s1714_s23 = sld [smem:[#allocation15_spill]] }
 0x4cf   :  { %964 = vsyncpa [#allocation4], 1 }
 0x4d0   :  { %966 = vsyncpa [#allocation4 + $0x1], 1 }

</bundles_post_ra>
